<compile_context>
chip_gen: v7x
topology: tpu7x:2x2x1
jax: 0.10.0
libtpu: 0.0.40
codegen_flags: <defaults>
</compile_context>

<pallas_src>
import jax
import jax.numpy as jnp
from jax.experimental import pallas as pl
from jax.experimental.pallas import tpu as pltpu


def _conv_bn_relu_kernel(p_ref, w_ref, b_ref, o_ref):
    # p_ref: (tm, K_pad)     im2col patch tile (bf16)
    # w_ref: (K_pad, C_out)  conv weights with BN scale folded in (bf16)
    # b_ref: (1, C_out)      folded bias (conv bias + BN shift), f32
    acc = jnp.dot(p_ref[...], w_ref[...], preferred_element_type=jnp.float32)
    o_ref[...] = jnp.maximum(acc + b_ref[...], 0.0).astype(o_ref.dtype)


def initial_conv_layer(x, conv_w, conv_b, bn_gamma, bn_beta, bn_mean, bn_var,
                       *, eps=1e-5, tm=2048, matmul_dtype=jnp.bfloat16,
                       out_dtype=jnp.float32, out_layout="NCHW"):
    """Conv2d(3x3, pad=1) + BatchNorm2d (eval, running stats) + ReLU.

    Input is NCHW (PyTorch layout). out_layout="NCHW" matches the PyTorch
    module exactly; out_layout="NHWC" skips the final layout transpose (an
    extra full read+write of the output that dominates this memory-bound op)
    so a lane-dense downstream layer can consume the activation directly.
    """
    x = jnp.asarray(x, jnp.float32)
    B, C_in, H, W = x.shape
    C_out = conv_w.shape[0]
    K = 9 * C_in

    # ---------------- wrapper-side layout plumbing ----------------
    # NCHW -> NHWC, zero-pad spatially for the 3x3 / padding=1 conv; cast to
    # the MXU input dtype early so the materialized im2col is half-width.
    x_nhwc = jnp.transpose(x, (0, 2, 3, 1)).astype(matmul_dtype)
    x_pad = jnp.pad(x_nhwc, ((0, 0), (1, 1), (1, 1), (0, 0)))

    # im2col: stack the 9 taps -> (B, H, W, 9, C_in) -> (M, K)
    taps = [x_pad[:, dy:dy + H, dx:dx + W, :]
            for dy in range(3) for dx in range(3)]
    patches = jnp.stack(taps, axis=3).reshape(B * H * W, K)

    # Conv weight (C_out, C_in, 3, 3) -> (K, C_out), matching (dy, dx, c_in).
    w2 = jnp.transpose(conv_w.astype(jnp.float32), (2, 3, 1, 0)).reshape(K, C_out)

    # Fold conv bias + BatchNorm (running stats) into the weights and a bias:
    #   y = ((x*w) + conv_b - mean) * gamma/sqrt(var+eps) + beta
    #     = patches @ (w2 * scale) + bias
    inv_std = jax.lax.rsqrt(bn_var.astype(jnp.float32) + jnp.float32(eps))
    scale = bn_gamma.astype(jnp.float32) * inv_std
    bias = bn_beta.astype(jnp.float32) + (
        conv_b.astype(jnp.float32) - bn_mean.astype(jnp.float32)) * scale
    w2 = (w2 * scale[None, :]).astype(matmul_dtype)
    bias2 = bias.reshape(1, C_out)

    # ---------------- tiling ----------------
    M = B * H * W
    # Large row tiles amortize the ~0.35us/step grid overhead (this op is
    # HBM-bandwidth bound), but keep >= 4 grid steps so v7x's two TensorCores
    # stay load balanced on small inputs.
    tm = min(max(int(tm), 128), max(128, -(-M // 4)))
    tm = max(128, (tm // 16) * 16)           # (16,128) bf16-tile friendly rows
    M_pad = -(-M // tm) * tm

    K_pad = -(-K // 8) * 8                   # sublane-align the contraction dim
    patches = jnp.pad(patches, ((0, M_pad - M), (0, K_pad - K)))
    w2 = jnp.pad(w2, ((0, K_pad - K), (0, 0)))

    in_item = jnp.dtype(matmul_dtype).itemsize
    out_item = jnp.dtype(out_dtype).itemsize

    # Advisory cost estimate: flags this custom call as memory-bound to XLA.
    cost = pl.CostEstimate(
        flops=2 * M_pad * K_pad * C_out,
        transcendentals=0,
        bytes_accessed=(M_pad * K_pad * in_item + K_pad * C_out * in_item
                        + C_out * 4 + M_pad * C_out * out_item))

    # VMEM budget (patch tile is lane-padded K_pad -> 128 lanes in VMEM):
    # double-buffered inputs/outputs + resident weights/bias, plus headroom.
    vmem_needed = (2 * tm * 128 * in_item        # patch tile (lane padded)
                   + 2 * tm * C_out * out_item   # output tile
                   + 2 * K_pad * C_out * in_item # weights
                   + 2 * 128 * 4)                # bias
    vmem_limit = int(min(64 * 1024 * 1024,
                         max(vmem_needed + (8 << 20), 32 << 20)))

    out = pl.pallas_call(
        _conv_bn_relu_kernel,
        out_shape=jax.ShapeDtypeStruct((M_pad, C_out), out_dtype),
        grid=(M_pad // tm,),
        in_specs=[
            pl.BlockSpec((tm, K_pad), lambda i: (i, 0)),      # patch tile
            pl.BlockSpec((K_pad, C_out), lambda i: (0, 0)),   # BN-folded weights
            pl.BlockSpec((1, C_out), lambda i: (0, 0)),       # folded bias
        ],
        out_specs=pl.BlockSpec((tm, C_out), lambda i: (i, 0)),
        compiler_params=pltpu.CompilerParams(
            dimension_semantics=("parallel",),
            vmem_limit_bytes=vmem_limit),
        cost_estimate=cost,
    )(patches, w2, bias2)

    out = out[:M].reshape(B, H, W, C_out)
    if out_layout == "NHWC":
        return out
    return jnp.transpose(out, (0, 3, 1, 2))   # PyTorch NCHW


def _reference(x, conv_w, conv_b, gamma, beta, mean, var, eps=1e-5):
    y = jax.lax.conv_general_dilated(
        x, conv_w, window_strides=(1, 1), padding=((1, 1), (1, 1)),
        dimension_numbers=("NCHW", "OIHW", "NCHW"),
        precision=jax.lax.Precision.HIGHEST)
    y = y + conv_b.reshape(1, -1, 1, 1)
    y = (y - mean.reshape(1, -1, 1, 1)) * jax.lax.rsqrt(
        var.reshape(1, -1, 1, 1) + eps)
    y = y * gamma.reshape(1, -1, 1, 1) + beta.reshape(1, -1, 1, 1)
    return jnp.maximum(y, 0.0)


if __name__ == "__main__":
    key = jax.random.PRNGKey(0)
    ks = jax.random.split(key, 7)

    B, C_in, H, W, C_out = 2, 3, 16, 16, 128

    x = jax.random.normal(ks[0], (B, C_in, H, W), jnp.float32)
    conv_w = jax.random.normal(ks[1], (C_out, C_in, 3, 3), jnp.float32) * 0.1
    conv_b = jax.random.normal(ks[2], (C_out,), jnp.float32) * 0.1
    gamma = jax.random.uniform(ks[3], (C_out,), jnp.float32, 0.5, 1.5)
    beta = jax.random.normal(ks[4], (C_out,), jnp.float32) * 0.1
    mean = jax.random.normal(ks[5], (C_out,), jnp.float32) * 0.1
    var = jax.random.uniform(ks[6], (C_out,), jnp.float32, 0.5, 1.5)

    ref = _reference(x, conv_w, conv_b, gamma, beta, mean, var)

    # PyTorch-exact NCHW output path.
    out = initial_conv_layer(x, conv_w, conv_b, gamma, beta, mean, var)
    jax.block_until_ready(out)
    assert out.shape == ref.shape, (out.shape, ref.shape)
    max_err = float(jnp.max(jnp.abs(out - ref)))
    # bf16 MXU inputs (f32 accumulation): tolerance sized for a 27-term
    # contraction with O(1) activations.
    assert jnp.allclose(out, ref, rtol=1e-2, atol=1e-2), max_err

    # Transpose-free NHWC path (perf path for downstream fusion).
    out_nhwc = initial_conv_layer(x, conv_w, conv_b, gamma, beta, mean, var,
                                  out_layout="NHWC")
    jax.block_until_ready(out_nhwc)
    ref_nhwc = jnp.transpose(ref, (0, 2, 3, 1))
    assert out_nhwc.shape == ref_nhwc.shape
    assert jnp.allclose(out_nhwc, ref_nhwc, rtol=1e-2, atol=1e-2)

    print("KERNEL_OK")
</pallas_src>

<mosaic_0001>
module attributes {stable_mosaic.version = 11 : i64} {
  func.func @_conv_bn_relu_kernel(%arg0: i32, %arg1: memref<128x32xbf16, #tpu.memory_space<vmem>>, %arg2: memref<32x128xbf16, #tpu.memory_space<vmem>>, %arg3: memref<1x128xf32, #tpu.memory_space<vmem>>, %arg4: memref<128x128xf32, #tpu.memory_space<vmem>>) attributes {dimension_semantics = [#tpu.dimension_semantics<parallel>], iteration_bounds = array<i64: 4>, scalar_prefetch = 0 : i64, scratch_operands = 0 : i64, tpu.core_type = #tpu.core_type<tc>, window_params = [{transform_indices = @transform_0, window_bounds = array<i64: 128, 32>}, {pipeline_mode = #tpu.pipeline_mode<synchronous>, transform_indices = @transform_1, window_bounds = array<i64: 32, 128>}, {pipeline_mode = #tpu.pipeline_mode<synchronous>, transform_indices = @transform_2, window_bounds = array<i64: 1, 128>}, {transform_indices = @transform_3, window_bounds = array<i64: 128, 128>}]} {
    %c0 = arith.constant 0 : index
    %c0_0 = arith.constant 0 : index
    %0 = vector.load %arg1[%c0, %c0_0] : memref<128x32xbf16, #tpu.memory_space<vmem>>, vector<128x32xbf16>
    %c0_1 = arith.constant 0 : index
    %c0_2 = arith.constant 0 : index
    %1 = vector.load %arg2[%c0_1, %c0_2] : memref<32x128xbf16, #tpu.memory_space<vmem>>, vector<32x128xbf16>
    %cst = arith.constant dense<0.000000e+00> : vector<128x128xf32>
    %2 = tpu.matmul %0, %1, %cst {dimension_numbers = #tpu.dot_dimension_numbers<[1], [0], [0], [1], [0, 0, 1, 1], [], []>} : vector<128x32xbf16>, vector<32x128xbf16>, vector<128x128xf32> -> vector<128x128xf32>
    %c0_3 = arith.constant 0 : index
    %c0_4 = arith.constant 0 : index
    %3 = vector.load %arg3[%c0_3, %c0_4] : memref<1x128xf32, #tpu.memory_space<vmem>>, vector<1x128xf32>
    %4 = vector.broadcast %3 : vector<1x128xf32> to vector<128x128xf32>
    %5 = arith.addf %2, %4 : vector<128x128xf32>
    %cst_5 = arith.constant 0.000000e+00 : f32
    %6 = vector.broadcast %cst_5 : f32 to vector<128x128xf32>
    %7 = arith.maximumf %5, %6 : vector<128x128xf32>
    %c0_6 = arith.constant 0 : index
    %c0_7 = arith.constant 0 : index
    %8 = vector.load %arg4[%c0_6, %c0_7] : memref<128x128xf32, #tpu.memory_space<vmem>>, vector<128x128xf32>
    tpu.vector_store %arg4[%c0_6, %c0_7], %7 {strides = array<i32>} : memref<128x128xf32, #tpu.memory_space<vmem>>, vector<128x128xf32>,
    return
  }
  func.func @transform_0(%arg0: i32) -> (i32, i32) {
    %c0_i32 = arith.constant 0 : i32
    %c0_i32_0 = arith.constant 0 : i32
    return %arg0, %c0_i32 : i32, i32
  }
  func.func @transform_1(%arg0: i32) -> (i32, i32) {
    %c0_i32 = arith.constant 0 : i32
    %c0_i32_0 = arith.constant 0 : i32
    %c0_i32_1 = arith.constant 0 : i32
    return %c0_i32, %c0_i32_0 : i32, i32
  }
  func.func @transform_2(%arg0: i32) -> (i32, i32) {
    %c0_i32 = arith.constant 0 : i32
    %c0_i32_0 = arith.constant 0 : i32
    %c0_i32_1 = arith.constant 0 : i32
    return %c0_i32, %c0_i32_0 : i32, i32
  }
  func.func @transform_3(%arg0: i32) -> (i32, i32) {
    %c0_i32 = arith.constant 0 : i32
    %c0_i32_0 = arith.constant 0 : i32
    return %arg0, %c0_i32 : i32, i32
  }
}

</mosaic_0001>

<bundles_post_ra>
// kernel: tpu_custom_call.1
= control target key start
LH: loop header
LB: loop body
LE: loop exit
PB: predicated region body
PF: predicated region fallthrough
CT: control target
= control target key end

     0   :  { %8 = vsyncpa [#allocation3], 0  ;;  %s828_s0 = inlined_call_operand.vmem [shape: bf16[512,32], index: 0, kind: input, shape index: {}]   ;;  %s829_s1 = inlined_call_operand.vmem [shape: bf16[32,128], index: 1, kind: input, shape index: {}]   ;;  %s830_s2 = inlined_call_operand.vmem [shape: f32[1,128], index: 2, kind: input, shape index: {}]   ;;  %s831_s3 = inlined_call_operand.hbm [shape: f32[512,128], index: 3, kind: output, shape index: {}]  }
   0x1   :  { %10 = vsyncpa [#allocation3 + $0x1], 0  ;;  %s686_s12 = smov 0   ;;  %s688_s13 = smov 0  }
   0x2   :  { %s690_s14 = smov 0   ;;  %s692_s15 = smov 0  }
   0x3 LB: > { %s707_s16 = sadd.s32 4294967295, %s661_s15   ;;  %s482_s17 = sadd.s32 4294967294, %s661_s15   ;;  %s661_s15 = sphi %s692_s15, %s837_s15   ;;  %s657_s14 = sphi %s690_s14, %s836_s14   ;;  %s653_s13 = sphi %s688_s13, %s835_s13   ;;  %s649_s12 = sphi %s686_s12, %s834_s12  }
   0x4   : > { %s711_s18 = sadd.s32 1, %s661_s15   ;;  %s91_s19 = sadd.s32 1, %s657_s14 }
   0x5   : > { %s88_s20 = ssub.s32 %s661_s15, %s711_s18  ;;  %p101_p0 = scmp.ne.s32.totalorder %s657_s14, %s653_s13 }
   0x6   : > { %p89_p1 = scmp.eq.s32.totalorder %s88_s20, 0  ;;  %p102_p2 = scmp.eq.s32.totalorder %s707_s16, 3 }
   0x7   : > { %p107_p3 = scmp.ne.s32.totalorder %s653_s13, %s649_s12  ;;  %p108_p4 = scmp.eq.s32.totalorder %s482_s17, 3 }
   0x8   : > { %s722_s21 = scalar_select %p89_p1, %s657_s14, %s91_s19  }
   0x9   : > { %p724_p5 = por %p102_p2, %p101_p0  ;;  %p728_p6 = por %p108_p4, %p107_p3 }
   0xa   : > { %p485_p7 = scmp.ge.s32.totalorder %s661_s15, 1  ;;  %p141_p8 = scmp.lt.s32.totalorder %s661_s15, 5 }
   0xc   : > { %p142_p9 = pnand %p485_p7, %p141_p8 }
   0xd   : > { %v589_v0 = vld [vmem:[%s829_s1] sm:$0xff] (!%p142_p9)   ;;  %s487_s26 = sshll.u32 (!%p142_p9), %s707_s16, 4  ;;  %v590_v1 = vld [vmem:[%s829_s1 + $0x8] sm:$0xff] (!%p142_p9)   ;;  %vm252_vm0 = vcmask (!%p142_p9), 261120   ;;  %s162_s6 = sand.u32 (!%p142_p9), 1, %s653_s13  }
   0xe   : > { %145 = sbr.rel (%p142_p9) target bundleno = 269 (0x10d), region = 32  ;;  %p166_p10 = scmp.lt.s32.totalorder (!%p142_p9), %s487_s26, 63  ;;  %524 = vmatprep.subr.bf16.mxu0 (!%p142_p9), %v589_v0  ;;  %544 = vmatprep.subr.bf16.mxu1 (!%p142_p9), %v589_v0  ;;  %v489_v10 = vld [vmem:[%s830_s2] ss:$0 sm:$0xff] (!%p142_p9) }
   0xf   : > { %525 = vmatpush3.bf16.msra.mxu0 (!%p142_p9), %v589_v0  ;;  %546 = vmatpush3.bf16.msra.mxu1 (!%p142_p9), %v589_v0  ;;  %s486_s9 = sshll.u32 (!%p142_p9), %s162_s6, 7  ;;  %s513_s11 = sshll.u32 (!%p142_p9), %s707_s16, 11 }
  0x10   : > { %526 = vmatprep.subr.bf16.mxu0 (!%p142_p9), %v590_v1  ;;  %545 = vmatprep.subr.bf16.mxu1 (!%p142_p9), %v590_v1  ;;  %s758_s10 = scalar_lea.vmem (!%p142_p9), [#allocation2], %s486_s9  ;;  %s776_s20 = scalar_lea.hbm (!%p142_p9), %s831_s3, %s513_s11 }
  0x11   : > { %s420_s17 = sshll.u32 (!%p142_p9), %s758_s10, 4  ;;  %s787_s24 = scalar_lea.sflag (!%p142_p9), [#allocation3], %s162_s6  ;;  %s778_s17 = int_to_ptr.vmem [resolvable:$true] %s420_s17 }
  0x12   : > { %s599_s25 = scalar_lea.vmem (!%p142_p9), %s778_s17, 2048 }
  0x13   : > { %527 = vmatpush3.bf16.msra.mxu0 (!%p142_p9), %v590_v1  ;;  %547 = vmatpush3.bf16.msra.mxu1 (!%p142_p9), %v590_v1  ;;  %p600_p11 = scmp.ne.s32.totalorder (!%p142_p9), %s778_s17, %s599_s25 }
  0x15   : > { %s839_s26 = smov (!%p166_p10, %s487_s26), 63  ;;  %p601_p12 = pnand %p600_p11, %p724_p5 }
  0x16   : > { %s488_s29 = sshll.u32 %s839_s26, 2  ;;  %s663_s26 = smov [#allocation2]  }
  0x17   : > { %s169_s5 = scalar_lea.vmem %s828_s0, %s488_s29  ;;  %p602_p13 = pneg %p601_p12 }
  0x18   : > { %v591_v2 = vld [vmem:[%s169_s5] sm:$0xff]   ;;  %v593_v4 = vld [vmem:[%s169_s5 + $0x8] sm:$0xff]   ;;  %v595_v6 = vld [vmem:[%s169_s5 + $0x10] sm:$0xff]   ;;  %s603_s27 = sshll.u32 %s663_s26, 4  ;;  %s604_s27 = int_to_ptr.vmem [resolvable:$false] %s603_s27 }
  0x19   : > { %v592_v3 = vld [vmem:[%s169_s5 + $0x20] sm:$0xff]   ;;  %528 = vmatprep.mubr.msk.bf16.mxu0 %vm252_vm0, %v591_v2  ;;  %v594_v5 = vld [vmem:[%s169_s5 + $0x28] sm:$0xff]   ;;  %v596_v7 = vld [vmem:[%s169_s5 + $0x30] sm:$0xff]   ;;  %s605_s28 = scalar_lea.vmem %s604_s27, 4096  ;;  %p606_p0 = scmp.lt.s32.totalorder %s778_s17, %s604_s27 }
  0x1a   : > { %536 = vmatprep.mubr.msk.bf16.mxu1 %vm252_vm0, %v592_v3  ;;  %529 = vmatmul.mubr.msk.bf16.vlgmr.msra.gmra.mrb[0].mxu0 %vm252_vm0, %v593_v4  ;;  %v597_v8 = vld [vmem:[%s169_s5 + $0x18] sm:$0xff]   ;;  %p607_p1 = scmp.lt.s32.totalorder %s605_s28, %s599_s25 }
  0x1b   : > { %537 = vmatmul.mubr.msk.bf16.vlgmr.msra.gmra.mrb[0].mxu1 %vm252_vm0, %v594_v5  ;;  %532 = vmatprep.mubr.msk.bf16.mxu0 %vm252_vm0, %v595_v6  ;;  %v598_v9 = vld [vmem:[%s169_s5 + $0x38] sm:$0xff]  }
  0x1c   : > { %540 = vmatprep.mubr.msk.bf16.mxu1 %vm252_vm0, %v596_v7  ;;  %p608_p2 = por %p607_p1, %p606_p0 }
  0x1e   : > { %p609_p3 = pnand %p608_p2, %p602_p13 }
  0x22   : > { %533 = vmatmul.mubr.msk.bf16.gmra.mrb[4].mxu0 %vm252_vm0, %v597_v8 }
  0x23   : > { %541 = vmatmul.mubr.msk.bf16.gmra.mrb[4].mxu1 %vm252_vm0, %v598_v9 }
  0xed   : > { %v530_v11 = vpop.f32.mrb[0].mxu0 }
  0xee   : > { %v320_v12 = vadd.f32 %v530_v11, %v489_v10  ;;  %v538_v13 = vpop.f32.mrb[0].mxu1  ;;  %v311_v14 = vpop.f32.mrb[1].mxu0 }
  0xef   : > { %v352_v15 = vadd.f32 %v538_v13, %v489_v10  ;;  %v312_v16 = vadd.f32 %v489_v10, %v311_v14  ;;  %v343_v17 = vpop.f32.mrb[1].mxu1  ;;  %v531_v18 = vpop.f32.mrb[2].mxu0 }
  0xf0   : > { %v376_v19 = vmax.f32 %v320_v12, 0.0  ;;  %v344_v20 = vadd.f32 %v489_v10, %v343_v17  ;;  %v323_v21 = vadd.f32 %v531_v18, %v489_v10  ;;  %v539_v22 = vpop.f32.mrb[2].mxu1  ;;  %v314_v23 = vpop.f32.mrb[3].mxu0 }
  0xf1   : > { %v384_v24 = vmax.f32 %v352_v15, 0.0  ;;  %v374_v25 = vmax.f32 %v312_v16, 0.0  ;;  %v355_v26 = vadd.f32 %v539_v22, %v489_v10  ;;  %v315_v27 = vadd.f32 %v489_v10, %v314_v23  ;;  %v346_v28 = vpop.f32.mrb[3].mxu1 }
  0xf2   : > { %392 = vst [vmem:[%s758_s10 + $0x10] sm:$0xff] %v376_v19  ;;  %v382_v29 = vmax.f32 %v344_v20, 0.0  ;;  %v377_v30 = vmax.f32 %v323_v21, 0.0  ;;  %v347_v31 = vadd.f32 %v489_v10, %v346_v28 }
  0xf3   : > { %400 = vst [vmem:[%s758_s10 + $0x50] sm:$0xff] %v384_v24  ;;  %390 = vst [vmem:[%s758_s10] sm:$0xff] %v374_v25  ;;  %v385_v32 = vmax.f32 %v355_v26, 0.0  ;;  %v375_v33 = vmax.f32 %v315_v27, 0.0 }
  0xf4   : > { %398 = vst [vmem:[%s758_s10 + $0x40] sm:$0xff] %v382_v29  ;;  %393 = vst [vmem:[%s758_s10 + $0x18] sm:$0xff] %v377_v30  ;;  %v383_v34 = vmax.f32 %v347_v31, 0.0 }
  0xf5   : > { %401 = vst [vmem:[%s758_s10 + $0x58] sm:$0xff] %v385_v32  ;;  %391 = vst [vmem:[%s758_s10 + $0x8] sm:$0xff] %v375_v33  ;;  %v534_v35 = vpop.f32.mrb[4].mxu0 }
  0xf6   : > { %399 = vst [vmem:[%s758_s10 + $0x48] sm:$0xff] %v383_v34  ;;  %v336_v36 = vadd.f32 %v534_v35, %v489_v10  ;;  %v542_v37 = vpop.f32.mrb[4].mxu1  ;;  %v327_v38 = vpop.f32.mrb[5].mxu0 }
  0xf7   : > { %v368_v39 = vadd.f32 %v542_v37, %v489_v10  ;;  %v328_v40 = vadd.f32 %v489_v10, %v327_v38  ;;  %v359_v41 = vpop.f32.mrb[5].mxu1  ;;  %v535_v42 = vpop.f32.mrb[6].mxu0 }
  0xf8   : > { %v380_v43 = vmax.f32 %v336_v36, 0.0  ;;  %v360_v44 = vadd.f32 %v489_v10, %v359_v41  ;;  %v339_v45 = vadd.f32 %v535_v42, %v489_v10  ;;  %v543_v46 = vpop.f32.mrb[6].mxu1  ;;  %v330_v47 = vpop.f32.mrb[7].mxu0 }
  0xf9   : > { %v388_v48 = vmax.f32 %v368_v39, 0.0  ;;  %v378_v49 = vmax.f32 %v328_v40, 0.0  ;;  %v371_v50 = vadd.f32 %v543_v46, %v489_v10  ;;  %v331_v51 = vadd.f32 %v489_v10, %v330_v47  ;;  %v362_v52 = vpop.f32.mrb[7].mxu1 }
  0xfa   : > { %396 = vst [vmem:[%s758_s10 + $0x30] sm:$0xff] %v380_v43  ;;  %v386_v53 = vmax.f32 %v360_v44, 0.0  ;;  %v381_v54 = vmax.f32 %v339_v45, 0.0  ;;  %v363_v55 = vadd.f32 %v489_v10, %v362_v52 }
  0xfb   : > { %404 = vst [vmem:[%s758_s10 + $0x70] sm:$0xff] %v388_v48  ;;  %394 = vst [vmem:[%s758_s10 + $0x20] sm:$0xff] %v378_v49  ;;  %v389_v56 = vmax.f32 %v371_v50, 0.0  ;;  %v379_v57 = vmax.f32 %v331_v51, 0.0 }
  0xfc   : > { %402 = vst [vmem:[%s758_s10 + $0x60] sm:$0xff] %v386_v53  ;;  %397 = vst [vmem:[%s758_s10 + $0x38] sm:$0xff] %v381_v54  ;;  %v387_v58 = vmax.f32 %v363_v55, 0.0 }
  0xfd   : > { %405 = vst [vmem:[%s758_s10 + $0x78] sm:$0xff] %v389_v56  ;;  %395 = vst [vmem:[%s758_s10 + $0x28] sm:$0xff] %v379_v57 }
  0xfe   : > { %403 = vst [vmem:[%s758_s10 + $0x68] sm:$0xff] %v387_v58 }
  0xff   : > { %612 = shalt.err (!%p609_p3)
}
 0x100   : > { %s613_s29 = scalar_lea.hbm %s776_s20, 2048  ;;  %s617_s5 = scalar_lea.hbm %s831_s3, 8192 }
 0x101   : > { %p614_p4 = scmp.ne.s32.totalorder %s776_s20, %s613_s29  ;;  %p618_p9 = scmp.lt.u32.totalorder %s776_s20, %s831_s3 }
 0x102   : > { %p619_p10 = scmp.lt.u32.totalorder %s617_s5, %s613_s29  ;;  %p621_p12 = scmp.lt.u32.totalorder %s613_s29, %s776_s20 }
 0x103   : > { %p615_p7 = pnand %p614_p4, %p724_p5 }
 0x104   : > { %p620_p11 = por %p619_p10, %p618_p9 }
 0x105   : > { %p616_p8 = pneg %p615_p7 }
 0x106   : > { %p622_p13 = por %p621_p12, %p620_p11 }
 0x108   : > { %p623_p0 = pnand %p622_p13, %p616_p8 }
 0x10a   : > { %626 = shalt.err (!%p623_p0)
}
 0x10b   : > { %s664_s8 = smov 128   ;;  %s665_s9 = smov 8  }
 0x10c   : > { %548 = dma.vmem_to_hbm [thread:$0]  (%p724_p5), %s778_s17, 2048, %s776_s20, %s787_s24, %s664_s8, %s664_s8, %s665_s9  }
 0x10d PF: > { %p554_p1 = scmp.ge.s32.totalorder %s661_s15, 2  ;;  %s435_s10 = sand.u32 1, %s649_s12  }
 0x10e   : > { %s436_s11 = scalar_lea.sflag [#allocation3], %s435_s10 }
 0x10f   : > { %p551_p2 = pnand %p554_p1, %p728_p6 }
 0x111   : > { %644 = dma.done.wait (!%p551_p2), %s436_s11, 2048  }
 0x112   : > { %646 = vsyncadd (!%p551_p2), %s436_s11, 4294965248  ;;  %p13_p3 = scmp.ge.s32.totalorder %s711_s18, 6   ;;  %s834_s12 = smov %s653_s13 }
 0x113   : > { %s835_s13 = smov %s657_s14  ;;  %s836_s14 = smov %s722_s21 }
 0x114   : > { %s837_s15 = smov %s711_s18  ;;  %15 = sbr.rel (!%p13_p3) target bundleno = 3 (0x3), region = 67 }
 0x11b   :  { %441 = vsyncpa [#allocation3], 1 }
 0x11c   :  { %443 = vsyncpa [#allocation3 + $0x1], 1 }

</bundles_post_ra>
